<compile_context>
chip_gen: v6e
topology: v6e:2x2x1
jax: 0.10.0
libtpu: 0.0.40
codegen_flags: <defaults>
</compile_context>

<pallas_src>
import jax
import jax.numpy as jnp
from jax import lax
from jax.experimental import pallas as pl
from jax.experimental.pallas import tpu as pltpu


NUM_DEEP = 3        # matches Critic(num_deep=3)
HID = 32            # matches Critic(hid=32)
LANE = 128          # TPU lane width
SUBLANE = 8         # f32 sublane count
HID_PAD = 128       # lane-dense padded hidden width
DEFAULT_TILE_B = 1024


def _round_up(n, m):
    return (n + m - 1) // m * m


def critic_kernel(x_ref, w0_ref, wh_ref, v_ref, o_ref):
    """x:(TB,Sp) f32  w0:(Sp,128) bf16  wh:(3,128,128) bf16  v:(8,128) f32  o:(8,TB) f32.

    v rows: [b0, b1, b2, b3, wo_row, (bo,0,...,0), 0, 0]
    """
    # fc0: (TB, Sp) @ (Sp, 128) + b0  -- bf16 MXU operands, f32 accumulate.
    t = jnp.dot(x_ref[...].astype(jnp.bfloat16), w0_ref[...],
                preferred_element_type=jnp.float32) + v_ref[0:1, :]

    # hidden stack: relu(fc(t)); dropout is identity at inference.
    for i in range(NUM_DEEP):
        t = jnp.dot(t.astype(jnp.bfloat16), wh_ref[i],
                    preferred_element_type=jnp.float32) + v_ref[i + 1:i + 2, :]
        t = jnp.maximum(t, 0.0)

    # out head: contract the lane-dense (1,128) wo row against t's lane dim
    # (rhs-transposed matmul) -> lane-dense (1, TB) row; no (TB,1) masked stores.
    wo_row = v_ref[NUM_DEEP + 1:NUM_DEEP + 2, :]     # (1, 128)
    bo = v_ref[NUM_DEEP + 2:NUM_DEEP + 3, 0:1]       # (1, 1)
    row = lax.dot_general(wo_row, t, (((1,), (1,)), ((), ())),
                          preferred_element_type=jnp.float32) + bo   # (1, TB)
    o_ref[...] = jnp.broadcast_to(row, o_ref.shape)


def _pick_tile_b(b, sizein_pad):
    """Batch tile: big enough to amortize per-step overhead, small enough that
    the double-buffered x tile stays ~<=4 MiB (fits default scoped VMEM on
    v5e/v6e/v7x)."""
    cap = max(LANE, (4 << 20) // (sizein_pad * 4) // LANE * LANE)
    tile = min(DEFAULT_TILE_B, cap)
    if b <= tile:
        return _round_up(b, SUBLANE)
    return tile


def _critic_pallas(x2d, w0p, wh, vpack, tile_b):
    bp, sp = x2d.shape
    num_tiles = bp // tile_b
    return pl.pallas_call(
        critic_kernel,
        out_shape=jax.ShapeDtypeStruct((SUBLANE, bp), jnp.float32),
        grid_spec=pltpu.PrefetchScalarGridSpec(
            num_scalar_prefetch=0,
            grid=(num_tiles,),
            in_specs=[
                pl.BlockSpec((tile_b, sp), lambda i: (i, 0)),
                # weights: constant index maps -> DMA'd once, VMEM-resident.
                pl.BlockSpec((sp, HID_PAD), lambda i: (0, 0)),
                pl.BlockSpec((NUM_DEEP, HID_PAD, HID_PAD), lambda i: (0, 0, 0)),
                pl.BlockSpec((SUBLANE, HID_PAD), lambda i: (0, 0)),
            ],
            out_specs=pl.BlockSpec((SUBLANE, tile_b), lambda i: (0, i)),
        ),
        compiler_params=pltpu.CompilerParams(
            dimension_semantics=("parallel",)),
    )(x2d, w0p, wh, vpack)


def pack_params(params, sizein):
    """Pack the 10 Linear tensors into 3 lane-dense arrays (done once, reused).

    Weights go to bf16 (MXU-native, half the DMA bytes); biases / head row /
    head bias stay f32 in a single (8, 128) vector pack.
    """
    sizein_pad = _round_up(sizein, LANE)

    # fc0 weight: (sizein, HID) -> (sizein_pad, HID_PAD), zero padded, bf16.
    w0p = jnp.zeros((sizein_pad, HID_PAD), jnp.bfloat16)
    w0p = w0p.at[:sizein, :HID].set(params["w0"].astype(jnp.bfloat16))

    # hidden weights stacked: (NUM_DEEP, HID_PAD, HID_PAD), bf16.
    wh = jnp.zeros((NUM_DEEP, HID_PAD, HID_PAD), jnp.bfloat16)
    for i in range(NUM_DEEP):
        wh = wh.at[i, :HID, :HID].set(params[f"w{i + 1}"].astype(jnp.bfloat16))

    # vector pack: biases + output-head row + output bias, one (8, 128) f32 tile.
    vpack = jnp.zeros((SUBLANE, HID_PAD), jnp.float32)
    vpack = vpack.at[0, :HID].set(params["b0"].reshape(-1))
    for i in range(NUM_DEEP):
        vpack = vpack.at[i + 1, :HID].set(params[f"b{i + 1}"].reshape(-1))
    vpack = vpack.at[NUM_DEEP + 1, :HID].set(params["wo"].reshape(-1))
    vpack = vpack.at[NUM_DEEP + 2, 0].set(params["bo"].reshape(()))

    return w0p, wh, vpack, sizein_pad


def critic_forward_batched(xs, packed):
    """Throughput path: (B, sizein) -> (B, 1); grid-tiled over the batch."""
    w0p, wh, vpack, sizein_pad = packed
    xs = xs.reshape(xs.shape[0], -1)
    if xs.dtype != jnp.float32:
        xs = xs.astype(jnp.float32)
    b, s = xs.shape

    tile_b = _pick_tile_b(b, sizein_pad)
    bp = _round_up(b, tile_b)
    pad_r, pad_c = bp - b, sizein_pad - s
    if pad_r or pad_c:
        xs = jnp.pad(xs, ((0, pad_r), (0, pad_c)))

    out = _critic_pallas(xs, w0p, wh, vpack, tile_b)   # (8, bp); row 0 is real
    return out[0, :b].reshape(b, 1)


def critic_forward(x, packed):
    """Module-equivalent path: t.reshape(1, -1) -> (1, 1)."""
    # Batch-1 is launch/DMA-latency bound; reuse the batched kernel.
    return critic_forward_batched(x.reshape(1, -1), packed)


def init_critic_params(key, sizein, hid=HID):
    """Deterministic init mimicking PyTorch nn.Linear (uniform +-1/sqrt(fan_in)).

    Weights are stored (in, out) for x @ W; biases as (1, out).
    """
    def linear(k, fan_in, fan_out):
        kw, kb = jax.random.split(k)
        bound = 1.0 / (fan_in ** 0.5)
        w = jax.random.uniform(kw, (fan_in, fan_out), jnp.float32, -bound, bound)
        b = jax.random.uniform(kb, (1, fan_out), jnp.float32, -bound, bound)
        return w, b

    keys = jax.random.split(key, 2 + NUM_DEEP)
    params = {}
    params["w0"], params["b0"] = linear(keys[0], sizein, hid)
    for i in range(NUM_DEEP):
        w, b = linear(keys[1 + i], hid, hid)
        params[f"w{i + 1}"], params[f"b{i + 1}"] = w, b
    params["wo"], params["bo"] = linear(keys[1 + NUM_DEEP], hid, 1)
    return params


def _reference(x2d, params):
    t = x2d
    t = t @ params["w0"] + params["b0"]
    for i in range(NUM_DEEP):
        t = jnp.maximum(t @ params[f"w{i + 1}"] + params[f"b{i + 1}"], 0.0)
    return t @ params["wo"] + params["bo"]


if __name__ == "__main__":
    key = jax.random.PRNGKey(0)
    k_x, k_p, k_b, k_g = jax.random.split(key, 4)

    # Small example input: (8, 16) -> flattened sizein = 128.
    x = jax.random.normal(k_x, (8, 16), dtype=jnp.float32)
    sizein = x.size

    params = init_critic_params(k_p, sizein, hid=HID)
    packed = pack_params(params, sizein)

    # bf16 MXU operands -> loosened tolerance vs. the f32 reference.
    ATOL, RTOL = 2e-2, 2e-2

    # Module-equivalent batch-1 forward.
    out = jax.block_until_ready(critic_forward(x, packed))
    assert out.shape == (1, 1), out.shape
    ref = _reference(x.reshape(1, -1), params)
    assert jnp.allclose(out, ref, atol=ATOL, rtol=RTOL), (out, ref)

    # Small batched forward.
    B = 4
    xs = jax.random.normal(k_b, (B, sizein), dtype=jnp.float32)
    outs = jax.block_until_ready(critic_forward_batched(xs, packed))
    assert outs.shape == (B, 1), outs.shape
    refs = _reference(xs, params)
    assert jnp.allclose(outs, refs, atol=ATOL, rtol=RTOL), (outs, refs)

    # Larger batch exercising the multi-tile grid path (ragged last tile).
    BG = 2500
    xg = jax.random.normal(k_g, (BG, sizein), dtype=jnp.float32)
    outg = jax.block_until_ready(critic_forward_batched(xg, packed))
    assert outg.shape == (BG, 1), outg.shape
    refg = _reference(xg, params)
    assert jnp.allclose(outg, refg, atol=ATOL, rtol=RTOL)

    print("KERNEL_OK")
</pallas_src>

<mosaic_0001>
module attributes {stable_mosaic.version = 11 : i64} {
  func.func @critic_kernel(%arg0: i32, %arg1: memref<8x128xf32, #tpu.memory_space<vmem>>, %arg2: memref<128x128xbf16, #tpu.memory_space<vmem>>, %arg3: memref<3x128x128xbf16, #tpu.memory_space<vmem>>, %arg4: memref<8x128xf32, #tpu.memory_space<vmem>>, %arg5: memref<8x8xf32, #tpu.memory_space<vmem>>) attributes {dimension_semantics = [#tpu.dimension_semantics<parallel>], iteration_bounds = array<i64: 1>, scalar_prefetch = 0 : i64, scratch_operands = 0 : i64, tpu.core_type = #tpu.core_type<tc>, window_params = [{transform_indices = @transform_0, window_bounds = array<i64: 8, 128>}, {pipeline_mode = #tpu.pipeline_mode<synchronous>, transform_indices = @transform_1, window_bounds = array<i64: 128, 128>}, {pipeline_mode = #tpu.pipeline_mode<synchronous>, transform_indices = @transform_2, window_bounds = array<i64: 3, 128, 128>}, {pipeline_mode = #tpu.pipeline_mode<synchronous>, transform_indices = @transform_3, window_bounds = array<i64: 8, 128>}, {transform_indices = @transform_4, window_bounds = array<i64: 8, 8>}]} {
    %c0 = arith.constant 0 : index
    %c0_0 = arith.constant 0 : index
    %0 = vector.load %arg1[%c0, %c0_0] : memref<8x128xf32, #tpu.memory_space<vmem>>, vector<8x128xf32>
    %1 = arith.truncf %0 : vector<8x128xf32> to vector<8x128xbf16>
    %c0_1 = arith.constant 0 : index
    %c0_2 = arith.constant 0 : index
    %2 = vector.load %arg2[%c0_1, %c0_2] : memref<128x128xbf16, #tpu.memory_space<vmem>>, vector<128x128xbf16>
    %cst = arith.constant dense<0.000000e+00> : vector<8x128xf32>
    %3 = tpu.matmul %1, %2, %cst {dimension_numbers = #tpu.dot_dimension_numbers<[1], [0], [0], [1], [0, 0, 1, 1], [], []>} : vector<8x128xbf16>, vector<128x128xbf16>, vector<8x128xf32> -> vector<8x128xf32>
    %c0_3 = arith.constant 0 : index
    %c0_4 = arith.constant 0 : index
    %4 = vector.load %arg4[%c0_3, %c0_4] : memref<8x128xf32, #tpu.memory_space<vmem>>, vector<1x128xf32>
    %5 = vector.broadcast %4 : vector<1x128xf32> to vector<8x128xf32>
    %6 = arith.addf %3, %5 : vector<8x128xf32>
    %7 = arith.truncf %6 : vector<8x128xf32> to vector<8x128xbf16>
    %c0_5 = arith.constant 0 : index
    %c0_6 = arith.constant 0 : index
    %c0_7 = arith.constant 0 : index
    %8 = vector.load %arg3[%c0_5, %c0_6, %c0_7] : memref<3x128x128xbf16, #tpu.memory_space<vmem>>, vector<1x128x128xbf16>
    %9 = vector.shape_cast %8 : vector<1x128x128xbf16> to vector<128x128xbf16>
    %cst_8 = arith.constant dense<0.000000e+00> : vector<8x128xf32>
    %10 = tpu.matmul %7, %9, %cst_8 {dimension_numbers = #tpu.dot_dimension_numbers<[1], [0], [0], [1], [0, 0, 1, 1], [], []>} : vector<8x128xbf16>, vector<128x128xbf16>, vector<8x128xf32> -> vector<8x128xf32>
    %c1 = arith.constant 1 : index
    %c0_9 = arith.constant 0 : index
    %11 = vector.load %arg4[%c1, %c0_9] : memref<8x128xf32, #tpu.memory_space<vmem>>, vector<1x128xf32>
    %12 = vector.broadcast %11 : vector<1x128xf32> to vector<8x128xf32>
    %13 = arith.addf %10, %12 : vector<8x128xf32>
    %cst_10 = arith.constant 0.000000e+00 : f32
    %14 = vector.broadcast %cst_10 : f32 to vector<8x128xf32>
    %15 = arith.maximumf %13, %14 : vector<8x128xf32>
    %16 = arith.truncf %15 : vector<8x128xf32> to vector<8x128xbf16>
    %c1_11 = arith.constant 1 : index
    %c0_12 = arith.constant 0 : index
    %c0_13 = arith.constant 0 : index
    %17 = vector.load %arg3[%c1_11, %c0_12, %c0_13] : memref<3x128x128xbf16, #tpu.memory_space<vmem>>, vector<1x128x128xbf16>
    %18 = vector.shape_cast %17 : vector<1x128x128xbf16> to vector<128x128xbf16>
    %cst_14 = arith.constant dense<0.000000e+00> : vector<8x128xf32>
    %19 = tpu.matmul %16, %18, %cst_14 {dimension_numbers = #tpu.dot_dimension_numbers<[1], [0], [0], [1], [0, 0, 1, 1], [], []>} : vector<8x128xbf16>, vector<128x128xbf16>, vector<8x128xf32> -> vector<8x128xf32>
    %c2 = arith.constant 2 : index
    %c0_15 = arith.constant 0 : index
    %20 = vector.load %arg4[%c2, %c0_15] : memref<8x128xf32, #tpu.memory_space<vmem>>, vector<1x128xf32>
    %21 = vector.broadcast %20 : vector<1x128xf32> to vector<8x128xf32>
    %22 = arith.addf %19, %21 : vector<8x128xf32>
    %cst_16 = arith.constant 0.000000e+00 : f32
    %23 = vector.broadcast %cst_16 : f32 to vector<8x128xf32>
    %24 = arith.maximumf %22, %23 : vector<8x128xf32>
    %25 = arith.truncf %24 : vector<8x128xf32> to vector<8x128xbf16>
    %c2_17 = arith.constant 2 : index
    %c0_18 = arith.constant 0 : index
    %c0_19 = arith.constant 0 : index
    %26 = vector.load %arg3[%c2_17, %c0_18, %c0_19] : memref<3x128x128xbf16, #tpu.memory_space<vmem>>, vector<1x128x128xbf16>
    %27 = vector.shape_cast %26 : vector<1x128x128xbf16> to vector<128x128xbf16>
    %cst_20 = arith.constant dense<0.000000e+00> : vector<8x128xf32>
    %28 = tpu.matmul %25, %27, %cst_20 {dimension_numbers = #tpu.dot_dimension_numbers<[1], [0], [0], [1], [0, 0, 1, 1], [], []>} : vector<8x128xbf16>, vector<128x128xbf16>, vector<8x128xf32> -> vector<8x128xf32>
    %c3 = arith.constant 3 : index
    %c0_21 = arith.constant 0 : index
    %29 = vector.load %arg4[%c3, %c0_21] : memref<8x128xf32, #tpu.memory_space<vmem>>, vector<1x128xf32>
    %30 = vector.broadcast %29 : vector<1x128xf32> to vector<8x128xf32>
    %31 = arith.addf %28, %30 : vector<8x128xf32>
    %cst_22 = arith.constant 0.000000e+00 : f32
    %32 = vector.broadcast %cst_22 : f32 to vector<8x128xf32>
    %33 = arith.maximumf %31, %32 : vector<8x128xf32>
    %c4 = arith.constant 4 : index
    %c0_23 = arith.constant 0 : index
    %34 = vector.load %arg4[%c4, %c0_23] : memref<8x128xf32, #tpu.memory_space<vmem>>, vector<1x128xf32>
    %c5 = arith.constant 5 : index
    %c0_24 = arith.constant 0 : index
    %35 = vector.load %arg4[%c5, %c0_24] : memref<8x128xf32, #tpu.memory_space<vmem>>, vector<1x1xf32>
    %cst_25 = arith.constant dense<0.000000e+00> : vector<1x8xf32>
    %36 = tpu.matmul %34, %33, %cst_25 {dimension_numbers = #tpu.dot_dimension_numbers<[1], [1], [0], [0], [0, 0, 1, 0], [], []>} : vector<1x128xf32>, vector<8x128xf32>, vector<1x8xf32> -> vector<1x8xf32>
    %37 = vector.broadcast %35 : vector<1x1xf32> to vector<1x8xf32>
    %38 = arith.addf %36, %37 : vector<1x8xf32>
    %39 = vector.shape_cast %38 : vector<1x8xf32> to vector<1x8xf32>
    %40 = vector.broadcast %39 : vector<1x8xf32> to vector<8x8xf32>
    %c0_26 = arith.constant 0 : index
    %c0_27 = arith.constant 0 : index
    %41 = vector.load %arg5[%c0_26, %c0_27] : memref<8x8xf32, #tpu.memory_space<vmem>>, vector<8x8xf32>
    tpu.vector_store %arg5[%c0_26, %c0_27], %40 {strides = array<i32>} : memref<8x8xf32, #tpu.memory_space<vmem>>, vector<8x8xf32>,
    return
  }
  func.func @transform_0(%arg0: i32) -> (i32, i32) {
    %c0_i32 = arith.constant 0 : i32
    %c0_i32_0 = arith.constant 0 : i32
    return %arg0, %c0_i32 : i32, i32
  }
  func.func @transform_1(%arg0: i32) -> (i32, i32) {
    %c0_i32 = arith.constant 0 : i32
    %c0_i32_0 = arith.constant 0 : i32
    %c0_i32_1 = arith.constant 0 : i32
    return %c0_i32, %c0_i32_0 : i32, i32
  }
  func.func @transform_2(%arg0: i32) -> (i32, i32, i32) {
    %c0_i32 = arith.constant 0 : i32
    %c0_i32_0 = arith.constant 0 : i32
    %c0_i32_1 = arith.constant 0 : i32
    %c0_i32_2 = arith.constant 0 : i32
    return %c0_i32, %c0_i32_0, %c0_i32_1 : i32, i32, i32
  }
  func.func @transform_3(%arg0: i32) -> (i32, i32) {
    %c0_i32 = arith.constant 0 : i32
    %c0_i32_0 = arith.constant 0 : i32
    %c0_i32_1 = arith.constant 0 : i32
    return %c0_i32, %c0_i32_0 : i32, i32
  }
  func.func @transform_4(%arg0: i32) -> (i32, i32) {
    %c0_i32 = arith.constant 0 : i32
    %c0_i32_0 = arith.constant 0 : i32
    return %c0_i32, %arg0 : i32, i32
  }
}

</mosaic_0001>

<bundles_post_ra>
// kernel: tpu_custom_call.1
= control target key start
LH: loop header
LB: loop body
LE: loop exit
PB: predicated region body
PF: predicated region fallthrough
CT: control target
= control target key end

     0   :  { %9 = vsyncpa [#allocation3], 0  ;;  %s1019_s0 = inlined_call_operand.hbm [shape: f32[8,128], index: 0, kind: input, shape index: {}]   ;;  %s1020_s1 = inlined_call_operand.hbm [shape: bf16[128,128], index: 1, kind: input, shape index: {}]   ;;  %s1021_s2 = inlined_call_operand.hbm [shape: bf16[3,128,128], index: 2, kind: input, shape index: {}]   ;;  %s1022_s3 = inlined_call_operand.hbm [shape: f32[8,128], index: 3, kind: input, shape index: {}]   ;;  %s1023_s4 = inlined_call_operand.hbm [shape: f32[8,8], index: 4, kind: output, shape index: {}]  }
   0x1   :  { %10 = vsyncpa [#allocation6], 0 }
   0x2   :  { %11 = vsyncpa [#allocation9], 0 }
   0x3   :  { %12 = vsyncpa [#allocation4], 0  ;;  %s926_s15 = smov [#allocation5]  }
   0x4   :  { %s28_s16 = sshll.u32 %s926_s15, 4  ;;  %s29_s16 = int_to_ptr.vmem [resolvable:$true] %s28_s16 }
   0x5   :  { %s826_s17 = scalar_lea.vmem %s29_s16, 1024  ;;  %p831_p1 = scmp.lt.s32.totalorder %s29_s16, %s29_s16 }
   0x6   :  { %p827_p0 = scmp.ne.s32.totalorder %s29_s16, %s826_s17  ;;  %p832_p2 = scmp.lt.s32.totalorder %s826_s17, %s826_s17 }
   0x8   :  { %p833_p3 = por %p832_p2, %p831_p1 }
   0xa   :  { %p834_p4 = pnand %p833_p3, %p827_p0 }
   0xc   :  { %837 = shalt.err (!%p834_p4)
}
   0xd   :  { %s927_s18 = smov 64   ;;  %s928_s19 = smov 4  }
   0xe   :  { %34 = dma.hbm_to_vmem [thread:$0]  %s1020_s1, 1024, %s29_s16, [#allocation6], %s927_s18, %s927_s18, %s928_s19  }
   0xf   :  { %s929_s22 = smov [#allocation2]   ;;  %s930_s24 = smov [#allocation7]  }
  0x10   :  { %s19_s23 = sshll.u32 %s929_s22, 4  ;;  %s40_s25 = sshll.u32 %s930_s24, 4  ;;  %s20_s23 = int_to_ptr.vmem [resolvable:$true] %s19_s23  ;;  %s41_s25 = int_to_ptr.vmem [resolvable:$true] %s40_s25 }
  0x11   :  { %s846_s26 = scalar_lea.vmem %s20_s23, 128  ;;  %p851_p6 = scmp.lt.s32.totalorder %s20_s23, %s20_s23 }
  0x12   :  { %p847_p5 = scmp.ne.s32.totalorder %s20_s23, %s846_s26  ;;  %p852_p7 = scmp.lt.s32.totalorder %s846_s26, %s846_s26 }
  0x14   :  { %p853_p8 = por %p852_p7, %p851_p6 }
  0x16   :  { %p854_p9 = pnand %p853_p8, %p847_p5 }
  0x18   :  { %857 = shalt.err (!%p854_p9)
}
  0x19   :  { %22 = dma.hbm_to_vmem [thread:$0]  %s1019_s0, 128, %s20_s23, [#allocation3]  }
  0x1a   :  { %s866_s29 = scalar_lea.vmem %s41_s25, 3072  ;;  %p871_p11 = scmp.lt.s32.totalorder %s41_s25, %s41_s25 }
  0x1b   :  { %p867_p10 = scmp.ne.s32.totalorder %s41_s25, %s866_s29  ;;  %p872_p12 = scmp.lt.s32.totalorder %s866_s29, %s866_s29 }
  0x1d   :  { %p873_p13 = por %p872_p12, %p871_p11 }
  0x1f   :  { %p874_p0 = pnand %p873_p13, %p867_p10 }
  0x21   :  { %877 = shalt.err (!%p874_p0)
}
  0x22   :  { %46 = dma.hbm_to_vmem [thread:$0]  %s1021_s2, 3072, %s41_s25, [#allocation6], %s927_s18, %s927_s18, %s928_s19  }
  0x23   :  { %s931_s5 = smov [#allocation8]  }
  0x24   :  { %s53_s6 = sshll.u32 %s931_s5, 4  ;;  %s54_s6 = int_to_ptr.vmem [resolvable:$true] %s53_s6 }
  0x25   :  { %s886_s7 = scalar_lea.vmem %s54_s6, 128  ;;  %p891_p2 = scmp.lt.s32.totalorder %s54_s6, %s54_s6 }
  0x26   :  { %p887_p1 = scmp.ne.s32.totalorder %s54_s6, %s886_s7  ;;  %p892_p3 = scmp.lt.s32.totalorder %s886_s7, %s886_s7 }
  0x28   :  { %p893_p4 = por %p892_p3, %p891_p2 }
  0x2a   :  { %p894_p5 = pnand %p893_p4, %p887_p1 }
  0x2c   :  { %897 = shalt.err (!%p894_p5)
}
  0x2d   :  { %56 = dma.hbm_to_vmem [thread:$0]  %s1022_s3, 128, %s54_s6, [#allocation9]  }
  0x2e   :  { %918 = dma.done.wait [#allocation3], 128  }
  0x2f   :  { %919 = vsyncadd [#allocation3], 4294967168 }
  0x30   :  { %920 = dma.done.wait [#allocation6], 4096  }
  0x31   :  { %921 = vsyncadd [#allocation6], 4294963200 }
  0x32   :  { %922 = dma.done.wait [#allocation9], 128  }
  0x33   :  { %923 = vsyncadd [#allocation9], 4294967168  ;;  %v932_v0 = vmov 0.0   ;;  %vm933_vm0 = vmmov 0   ;;  %v786_v1 = vld [vmem:[#allocation5 + $0x38] sm:$0xff]   ;;  %v787_v2 = vld [vmem:[#allocation5 + $0x30] sm:$0xff]  }
  0x34   :  { %690 = vmatprep.subr.bf16.mxu0 %v932_v0  ;;  %706 = vmatprep.mubr.msk.bf16.mxu0 %vm933_vm0, %v932_v0  ;;  %v788_v3 = vld [vmem:[#allocation5 + $0x28] sm:$0xff]   ;;  %v794_v4 = vld [vmem:[#allocation7 + $0x38] sm:$0xff]   ;;  %v789_v5 = vld [vmem:[#allocation5 + $0x20] sm:$0xff]   ;;  %v934_v59 = vmov 0   ;;  %s935_s2 = smov [#allocation10]   ;;  %vm597_vm1 = vcmask 64512  }
  0x35   :  { %710 = vmatprep.subr.bf16.mxu1 %v932_v0  ;;  %726 = vmatprep.mubr.msk.bf16.mxu1 %vm933_vm0, %v932_v0  ;;  %v795_v6 = vld [vmem:[#allocation7 + $0x30] sm:$0xff]   ;;  %v790_v7 = vld [vmem:[#allocation5 + $0x18] sm:$0xff]   ;;  %v796_v8 = vld [vmem:[#allocation7 + $0x28] sm:$0xff]   ;;  %s605_s3 = sshll.u32 %s935_s2, 4  ;;  %s606_s3 = int_to_ptr.vmem [resolvable:$true] %s605_s3 }
  0x36   :  { %691 = vmatpush3.bf16.msra.mxu0 %v786_v1  ;;  %711 = vmatpush3.bf16.msra.mxu1 %v794_v4  ;;  %v791_v9 = vld [vmem:[#allocation5 + $0x10] sm:$0xff]   ;;  %v797_v10 = vld [vmem:[#allocation7 + $0x20] sm:$0xff]   ;;  %v792_v11 = vld [vmem:[#allocation5 + $0x8] sm:$0xff]   ;;  %v593_v4 = vlaneseq  ;;  %s898_s9 = scalar_lea.vmem %s606_s3, 128  ;;  %p903_p7 = scmp.lt.s32.totalorder %s606_s3, %s606_s3 }
  0x37   :  { %692 = vmatprep.subr.bf16.mxu0 %v932_v0  ;;  %712 = vmatprep.subr.bf16.mxu1 %v932_v0  ;;  %v798_v12 = vld [vmem:[#allocation7 + $0x18] sm:$0xff]   ;;  %v793_v13 = vld [vmem:[#allocation5] sm:$0xff]   ;;  %v799_v15 = vld [vmem:[#allocation7 + $0x10] sm:$0xff]   ;;  %p899_p6 = scmp.ne.s32.totalorder %s606_s3, %s898_s9  ;;  %p904_p8 = scmp.lt.s32.totalorder %s898_s9, %s898_s9 }
  0x38   :  { %v70_v14 = vld [vmem:[#allocation2] sm:$0xff]  ;;  %v800_v17 = vld [vmem:[#allocation7 + $0x8] sm:$0xff]   ;;  %v801_v18 = vld [vmem:[#allocation7] sm:$0xff]   ;;  %785 = vset.pattern.permute.xlu0 %v934_v59 }
  0x39   :  { %v71_v16 = vpack.c.bf16 %v70_v14, %v70_v14  ;;  %v802_v19 = vld [vmem:[#allocation7 + $0x78] sm:$0xff]   ;;  %v803_v20 = vld [vmem:[#allocation7 + $0x70] sm:$0xff]   ;;  %v804_v21 = vld [vmem:[#allocation7 + $0x68] sm:$0xff]   ;;  %p905_p9 = por %p904_p8, %p903_p7 }
  0x3a   :  { %693 = vmatpush3.bf16.msra.mxu0 %v787_v2  ;;  %713 = vmatpush3.bf16.msra.mxu1 %v795_v6  ;;  %v805_v22 = vld [vmem:[#allocation7 + $0x60] sm:$0xff]   ;;  %v806_v23 = vld [vmem:[#allocation7 + $0x58] sm:$0xff]   ;;  %v807_v24 = vld [vmem:[#allocation7 + $0x50] sm:$0xff]  }
  0x3b   :  { %694 = vmatprep.subr.bf16.mxu0 %v932_v0  ;;  %714 = vmatprep.subr.bf16.mxu1 %v932_v0  ;;  %v616_v25 = vld [vmem:[#allocation8] ss:$0 sm:$0xff]  ;;  %v808_v32 = vld [vmem:[#allocation7 + $0x48] sm:$0xff]   ;;  %v810_v34 = vld [vmem:[#allocation7 + $0xb8] sm:$0xff]   ;;  %p906_p10 = pnand %p905_p9, %p899_p6 }
  0x3c   :  { %v809_v33 = vld [vmem:[#allocation7 + $0x40] sm:$0xff]   ;;  %v811_v35 = vld [vmem:[#allocation7 + $0xb0] sm:$0xff]   ;;  %v812_v36 = vld [vmem:[#allocation7 + $0xa8] sm:$0xff]  }
  0x3d   :  { %v813_v37 = vld [vmem:[#allocation7 + $0xa0] sm:$0xff]   ;;  %v814_v38 = vld [vmem:[#allocation7 + $0x98] sm:$0xff]   ;;  %v815_v39 = vld [vmem:[#allocation7 + $0x90] sm:$0xff]  }
  0x3e   :  { %695 = vmatpush3.bf16.msra.mxu0 %v788_v3  ;;  %715 = vmatpush3.bf16.msra.mxu1 %v796_v8  ;;  %v625_v40 = vld [vmem:[#allocation8 + $0x1] ss:$0 sm:$0xff]  ;;  %v816_v48 = vld [vmem:[#allocation7 + $0x88] sm:$0xff]   ;;  %v634_v50 = vld [vmem:[#allocation8 + $0x2] ss:$0 sm:$0xff] }
  0x3f   :  { %696 = vmatprep.subr.bf16.mxu0 %v932_v0  ;;  %716 = vmatprep.subr.bf16.mxu1 %v932_v0  ;;  %v817_v49 = vld [vmem:[#allocation7 + $0x80] sm:$0xff]  }
  0x40   :  { %v517_v58 = vld [vmem:[#allocation8 + $0x5] sm:$0x1]  ;;  %v643_v60 = vld [vmem:[#allocation8 + $0x3] ss:$0 sm:$0xff]  ;;  %v516_v2 = vld [vmem:[#allocation8 + $0x4] sm:$0x1] }
  0x41   :  { %520 = vperm.xlu0 %785, %v517_v58  }
  0x42   :  { %697 = vmatpush3.bf16.msra.mxu0 %v789_v5  ;;  %717 = vmatpush3.bf16.msra.mxu1 %v797_v10  ;;  %v594_v5 = vshrl.u32 %v593_v4, 7 }
  0x43   :  { %698 = vmatprep.subr.bf16.mxu0 %v932_v0  ;;  %718 = vmatprep.subr.bf16.mxu1 %v932_v0 }
  0x46   :  { %699 = vmatpush3.bf16.msra.mxu0 %v790_v7  ;;  %719 = vmatpush3.bf16.msra.mxu1 %v798_v12  ;;  %v595_v7 = vsub.s32 0, %v594_v5 }
  0x47   :  { %700 = vmatprep.subr.bf16.mxu0 %v932_v0  ;;  %720 = vmatprep.subr.bf16.mxu1 %v932_v0 }
  0x4a   :  { %701 = vmatpush3.bf16.msra.mxu0 %v791_v9  ;;  %721 = vmatpush3.bf16.msra.mxu1 %v799_v15 }
  0x4b   :  { %702 = vmatprep.subr.bf16.mxu0 %v932_v0  ;;  %722 = vmatprep.subr.bf16.mxu1 %v932_v0 }
  0x4e   :  { %703 = vmatpush3.bf16.msra.mxu0 %v792_v11  ;;  %723 = vmatpush3.bf16.msra.mxu1 %v800_v17 }
  0x4f   :  { %704 = vmatprep.subr.bf16.mxu0 %v932_v0  ;;  %724 = vmatprep.subr.bf16.mxu1 %v932_v0 }
  0x52   :  { %705 = vmatpush3.bf16.msra.mxu0 %v793_v13  ;;  %725 = vmatpush3.bf16.msra.mxu1 %v801_v18 }
  0x53   :  { %730 = vmatprep.subr.bf16.mxu0 %v932_v0  ;;  %750 = vmatprep.subr.bf16.mxu1 %v932_v0 }
  0x55   :  { %707 = vmatmul.mubr.bf16.vlgmr.msra.gmra.mxu0 %v71_v16 }
  0x56   :  { %746 = vmatprep.mubr.msk.bf16.mxu0 %vm933_vm0, %v932_v0  ;;  %731 = vmatpush3.bf16.msra.mxu0 %v802_v19 }
  0x57   :  { %732 = vmatprep.subr.bf16.mxu0 %v932_v0 }
  0x5a   :  { %733 = vmatpush3.bf16.msra.mxu0 %v803_v20 }
  0x5b   :  { %734 = vmatprep.subr.bf16.mxu0 %v932_v0 }
  0x5e   :  { %735 = vmatpush3.bf16.msra.mxu0 %v804_v21 }
  0x5f   :  { %736 = vmatprep.subr.bf16.mxu0 %v932_v0 }
  0x62   :  { %737 = vmatpush3.bf16.msra.mxu0 %v805_v22 }
  0x63   :  { %738 = vmatprep.subr.bf16.mxu0 %v932_v0 }
  0x66   :  { %739 = vmatpush3.bf16.msra.mxu0 %v806_v23 }
  0x67   :  { %740 = vmatprep.subr.bf16.mxu0 %v932_v0 }
  0x6a   :  { %741 = vmatpush3.bf16.msra.mxu0 %v807_v24 }
  0x6b   :  { %742 = vmatprep.subr.bf16.mxu0 %v932_v0 }
  0x6e   :  { %743 = vmatpush3.bf16.msra.mxu0 %v808_v32 }
  0x6f   :  { %744 = vmatprep.subr.bf16.mxu0 %v932_v0 }
  0x72   :  { %745 = vmatpush3.bf16.msra.mxu0 %v809_v33 }
  0x73   :  { %770 = vmatprep.subr.mxu0 %v932_v0 }
  0xbc   :  { %v521_v6 = vpop.permute.xlu0 %520 }
 0x115   :  { %v175_v26 = vpop.f32.mrf.mxu0 }
 0x116   :  { %v176_v27 = vadd.f32 %v616_v25, %v175_v26 }
 0x117   :  { %v708_v28 = vpop.f32.mrf.mxu0 }
 0x118   :  { %v181_v29 = vpack.c.bf16 %v176_v27, %v176_v27 }
 0x119   :  { %v178_v30 = vpop.f32.mrf.mxu0 }
 0x11a   :  { %727 = vmatmul.mubr.bf16.vlgmr.msra.gmra.mxu1 %v181_v29 }
 0x11b   :  { %v709_v31 = vpop.f32.mrf.mxu0  ;;  %766 = vmatprep.mubr.msk.bf16.mxu1 %vm933_vm0, %v932_v0  ;;  %751 = vmatpush3.bf16.msra.mxu1 %v810_v34 }
 0x11c   :  { %752 = vmatprep.subr.bf16.mxu1 %v932_v0 }
 0x11f   :  { %753 = vmatpush3.bf16.msra.mxu1 %v811_v35 }
 0x120   :  { %754 = vmatprep.subr.bf16.mxu1 %v932_v0 }
 0x123   :  { %755 = vmatpush3.bf16.msra.mxu1 %v812_v36 }
 0x124   :  { %756 = vmatprep.subr.bf16.mxu1 %v932_v0 }
 0x127   :  { %757 = vmatpush3.bf16.msra.mxu1 %v813_v37 }
 0x128   :  { %758 = vmatprep.subr.bf16.mxu1 %v932_v0 }
 0x12b   :  { %759 = vmatpush3.bf16.msra.mxu1 %v814_v38 }
 0x12c   :  { %760 = vmatprep.subr.bf16.mxu1 %v932_v0 }
 0x12f   :  { %761 = vmatpush3.bf16.msra.mxu1 %v815_v39 }
 0x130   :  { %762 = vmatprep.subr.bf16.mxu1 %v932_v0 }
 0x133   :  { %763 = vmatpush3.bf16.msra.mxu1 %v816_v48 }
 0x134   :  { %764 = vmatprep.subr.bf16.mxu1 %v932_v0 }
 0x137   :  { %765 = vmatpush3.bf16.msra.mxu1 %v817_v49 }
 0x1da   :  { %v285_v41 = vpop.f32.mrf.mxu1 }
 0x1db   :  { %v286_v42 = vadd.f32 %v625_v40, %v285_v41 }
 0x1dc   :  { %v728_v43 = vpop.f32.mrf.mxu1 }
 0x1dd   :  { %v291_v44 = vmax.f32 %v286_v42, 0.0 }
 0x1de   :  { %v288_v45 = vpop.f32.mrf.mxu1 }
 0x1df   :  { %v292_v46 = vpack.c.bf16 %v291_v44, %v291_v44 }
 0x1e0   :  { %v729_v47 = vpop.f32.mrf.mxu1 }
 0x1e1   :  { %747 = vmatmul.mubr.bf16.vlgmr.msra.gmra.mxu0 %v292_v46 }
 0x1e2   :  { %772 = vmatprep.mubr.msk.f32.mxu0 %vm933_vm0, %v932_v0 }
 0x2a1   :  { %v397_v51 = vpop.f32.mrf.mxu0 }
 0x2a2   :  { %v398_v52 = vadd.f32 %v634_v50, %v397_v51 }
 0x2a3   :  { %v748_v53 = vpop.f32.mrf.mxu0 }
 0x2a4   :  { %v403_v54 = vmax.f32 %v398_v52, 0.0 }
 0x2a5   :  { %v400_v55 = vpop.f32.mrf.mxu0 }
 0x2a6   :  { %v404_v56 = vpack.c.bf16 %v403_v54, %v403_v54 }
 0x2a7   :  { %v749_v57 = vpop.f32.mrf.mxu0 }
 0x2a8   :  { %767 = vmatmul.mubr.bf16.vlgmr.msra.gmra.mxu1 %v404_v56 }
 0x368   :  { %v509_v61 = vpop.f32.mrf.mxu1 }
 0x369   :  { %v510_v62 = vadd.f32 %v643_v60, %v509_v61 }
 0x36a   :  { %v768_v63 = vpop.f32.mrf.mxu1 }
 0x36b   :  { %v515_v0 = vmax.f32 %v510_v62, 0.0 }
 0x36c   :  { %v512_v1 = vpop.f32.mrf.mxu1 }
 0x36d   :  { %771 = vmatpush3.xpose.msra.mxu0 %v515_v0 }
 0x36e   :  { %v769_v3 = vpop.f32.mrf.mxu1 }
 0x370   :  { %773 = vmatmul.mubr.f32.vlgmr.msra.gmra.mxu0 %v516_v2 }
 0x430   :  { %v589_v8 = vpop.f32.mrf.mxu0 }
 0x431   :  { %v590_v9 = vadd.f32 %v589_v8, %v521_v6 }
 0x432   :  { %v774_v10 = vpop.f32.mrf.mxu0 }
 0x433   :  { %v596_v11 = vrot.slane %v590_v9, %v595_v7 }
 0x435   :  { %598 = vst.msk [vmem:[#allocation10] sm:$0xff] %vm597_vm1, %v596_v11 }
 0x436   :  { %909 = shalt.err (!%p906_p10)
}
 0x437   :  { %608 = dma.vmem_to_hbm [thread:$0]  %s606_s3, 128, %s1023_s4, [#allocation4]  }
 0x438   :  { %924 = dma.done.wait [#allocation4], 128  }
 0x439   :  { %925 = vsyncadd [#allocation4], 4294967168 }
 0x43a   :  { %612 = vsyncpa [#allocation3], 1 }
 0x43b   :  { %613 = vsyncpa [#allocation6], 1 }
 0x43c   :  { %614 = vsyncpa [#allocation9], 1 }
 0x43d   :  { %615 = vsyncpa [#allocation4], 1 }

</bundles_post_ra>
